<compile_context>
chip_gen: v5e
topology: v5e:2x2
jax: 0.10.0
libtpu: 0.0.40
codegen_flags: <defaults>
</compile_context>

<pallas_src>
import jax
import jax.numpy as jnp
from jax import lax
from jax.experimental import pallas as pl
from jax.experimental.pallas import tpu as pltpu


def _round_up(n, m):
    return ((n + m - 1) // m) * m


def _critic_kernel(x_ref, sem_ref, w1x_ref, w1s_ref, b1_ref, w2_ref, b2_ref,
                   out_ref):
    mm_dtype = w1x_ref.dtype
    # fc1 on cat([x, sem], 1), expressed as two MXU pushes (no concat).
    # Activations are cast to the matmul dtype *after* the DMA, so the HBM
    # stream stays in the caller's dtype (no wrapper-side convert pass).
    h = jnp.dot(x_ref[...].astype(mm_dtype), w1x_ref[...],
                preferred_element_type=jnp.float32)
    h = h + jnp.dot(sem_ref[...].astype(mm_dtype), w1s_ref[...],
                    preferred_element_type=jnp.float32)
    h = h + b1_ref[...]                       # (tb, NDH) + (1, NDH), f32
    # LeakyReLU(0.2) — elementwise on the VPU, in f32.
    h = jnp.where(h > 0, h, 0.2 * h)
    # fc2 (output width 1): contract NDH of w2 (1, NDH) with NDH of h
    # (tb, NDH) -> lane-dense (1, tb) row.  MXU has slack (mem-bound kernel)
    # and the result lands directly in a dense lane layout.
    o = lax.dot_general(w2_ref[...], h,
                        dimension_numbers=(((1,), (1,)), ((), ())),
                        preferred_element_type=jnp.float32)      # (1, tb)
    o = o + b2_ref[...]                                          # + (1, 1)
    out_ref[...] = o.reshape(out_ref.shape).astype(out_ref.dtype)


def prepare_params(params, fea_size, matmul_dtype=jnp.float32):
    """One-time layout/dtype prep.

    PyTorch Linear stores W as (out, in); pre-transpose to (in, out), split
    fc1 along the input dim to match cat([x, sem], 1), and make biases 2-D.
    Done once at init so the per-call cost is exactly one pallas_call.
    """
    w1_t = params["w1"].T                                   # (Fea+Sem, NDH)
    return {
        "w1x": w1_t[:fea_size, :].astype(matmul_dtype),     # (FeaSize, NDH)
        "w1s": w1_t[fea_size:, :].astype(matmul_dtype),     # (SemSize, NDH)
        "b1": params["b1"].reshape(1, -1).astype(jnp.float32),      # (1, NDH)
        "w2_row": params["w2"].reshape(1, -1).astype(jnp.float32),  # (1, NDH)
        "b2": params["b2"].reshape(1, 1).astype(jnp.float32),       # (1, 1)
    }


def mlp_critic_forward(x, sem, prepared, *, block_b=512):
    """x: (B, FeaSize), sem: (B, SemSize). Returns (B, 1) float32."""
    w1x, w1s = prepared["w1x"], prepared["w1s"]
    b1, w2_row, b2 = prepared["b1"], prepared["w2_row"], prepared["b2"]
    B, fea = x.shape
    sem_sz = sem.shape[1]
    ndh = w1x.shape[1]
    mm_itemsize = jnp.dtype(w1x.dtype).itemsize
    act_itemsize = jnp.dtype(x.dtype).itemsize

    # Batch tile: multiple of 8 sublanes, capped at 512 rows (bounds the
    # (tb, NDH) f32 intermediate); if B fits in one tile, split it so the
    # grid has >= 2 steps and both v7x TensorCores get work.
    tb = min(_round_up(block_b, 8), 512)
    if B <= tb:
        tb = _round_up((B + 1) // 2, 8) if B > 8 else 8
    n_blocks = pl.cdiv(B, tb)

    # VMEM budget: double-buffered activation / out tiles, single-buffered
    # resident weights, plus f32 intermediates.  Cap at 75% of physical VMEM
    # (64 MiB per TC on v7x; 128 MiB on v5e/v6e).
    vmem_est = (2 * tb * (fea + sem_sz) * act_itemsize        # x/sem tiles
                + 2 * tb * 4                                  # out tile
                + (fea + sem_sz) * ndh * mm_itemsize          # W1 (1 buffer)
                + (2 * ndh + 1) * 4                           # b1, w2, b2
                + 3 * tb * ndh * 4)                           # h + temporaries
    try:
        phys_vmem = int(pltpu.get_tpu_info().vmem_capacity_bytes)
    except Exception:  # conservative fallback: assume v7x-sized VMEM
        phys_vmem = 64 << 20
    vmem_cap = (phys_vmem * 3) // 4
    vmem_limit = min(max(int(1.5 * vmem_est) + (2 << 20), 8 << 20), vmem_cap)

    cost = pl.CostEstimate(
        flops=2 * B * (fea + sem_sz + 1) * ndh,
        transcendentals=0,
        bytes_accessed=(B * (fea + sem_sz) * act_itemsize + B * 4
                        + (fea + sem_sz) * ndh * mm_itemsize
                        + (2 * ndh + 1) * 4),
    )

    def _resident(shape):
        # Constant-index (VMEM-resident) operand: single-buffer it.
        idx = lambda i, _s=shape: (0,) * len(_s)
        try:
            return pl.BlockSpec(shape, idx, pipeline_mode=pl.Buffered(1))
        except TypeError:  # older jax without pipeline_mode kwarg
            return pl.BlockSpec(shape, idx)

    out = pl.pallas_call(
        _critic_kernel,
        out_shape=jax.ShapeDtypeStruct((n_blocks, 1, tb), jnp.float32),
        grid=(n_blocks,),
        in_specs=[
            pl.BlockSpec((tb, fea), lambda i: (i, 0)),      # x tile
            pl.BlockSpec((tb, sem_sz), lambda i: (i, 0)),   # sem tile
            _resident((fea, ndh)),                          # W1x (resident)
            _resident((sem_sz, ndh)),                       # W1s (resident)
            _resident((1, ndh)),                            # b1
            _resident((1, ndh)),                            # w2 row
            _resident((1, 1)),                              # b2
        ],
        out_specs=pl.BlockSpec((1, 1, tb), lambda i: (i, 0, 0)),
        compiler_params=pltpu.CompilerParams(
            dimension_semantics=("parallel",),
            vmem_limit_bytes=vmem_limit),
        cost_estimate=cost,
    )(x, sem, w1x, w1s, b1, w2_row, b2)

    # Lane-dense (n_blocks, 1, tb) slab -> (B, 1) column (tail rows of the
    # ragged last block are unspecified and sliced off here).
    return out.reshape(-1)[:B].reshape(B, 1)


def init_params(key, sem_size, ndh, fea_size, dtype=jnp.float32):
    """Mirror weights_init: Linear weights ~ N(0, 0.02), biases = 0."""
    k1, k2 = jax.random.split(key)
    w1 = 0.02 * jax.random.normal(k1, (ndh, fea_size + sem_size), dtype)
    b1 = jnp.zeros((ndh,), dtype)
    w2 = 0.02 * jax.random.normal(k2, (1, ndh), dtype)
    b2 = jnp.zeros((1,), dtype)
    return {"w1": w1, "b1": b1, "w2": w2, "b2": b2}


def reference_forward(x, sem, params):
    """Pure-JAX reference matching the PyTorch forward exactly (full f32)."""
    hp = jax.lax.Precision.HIGHEST
    h = jnp.concatenate([x, sem], axis=1)
    h = jnp.matmul(h, params["w1"].T, precision=hp) + params["b1"]
    h = jnp.where(h > 0, h, 0.2 * h)
    return jnp.matmul(h, params["w2"].T, precision=hp) + params["b2"]


if __name__ == "__main__":
    # B deliberately not a tile multiple: auto-split gives 2 ragged tiles of
    # 24 rows -> exercises partial blocks + a multi-step "parallel" grid.
    B, SemSize, NDH, FeaSize = 40, 8, 32, 24

    key = jax.random.PRNGKey(0)
    kx, ksem, kp = jax.random.split(key, 3)
    x = jax.random.normal(kx, (B, FeaSize), jnp.float32)
    sem = jax.random.normal(ksem, (B, SemSize), jnp.float32)
    params = init_params(kp, SemSize, NDH, FeaSize)
    ref = reference_forward(x, sem, params)

    # --- f32 path (default) ---
    prep_f32 = prepare_params(params, FeaSize, jnp.float32)
    out = jax.block_until_ready(mlp_critic_forward(x, sem, prep_f32))
    assert out.shape == (B, 1), out.shape
    assert jnp.allclose(out, ref, atol=1e-3, rtol=1e-3), (
        "f32 mismatch, max abs err = %g" % float(jnp.max(jnp.abs(out - ref))))

    # --- bf16 matmul-input path (weights bf16; activations cast in-kernel) ---
    prep_bf16 = prepare_params(params, FeaSize, jnp.bfloat16)
    out_bf = jax.block_until_ready(mlp_critic_forward(x, sem, prep_bf16))
    rd = lambda a: a.astype(jnp.bfloat16).astype(jnp.float32)
    params_rd = {"w1": rd(params["w1"]), "b1": params["b1"],
                 "w2": params["w2"], "b2": params["b2"]}
    ref_bf = reference_forward(rd(x), rd(sem), params_rd)
    assert out_bf.shape == (B, 1), out_bf.shape
    assert jnp.allclose(out_bf, ref_bf, atol=2e-3, rtol=2e-3), (
        "bf16 mismatch, max abs err = %g"
        % float(jnp.max(jnp.abs(out_bf - ref_bf))))

    print("KERNEL_OK")
</pallas_src>

<mosaic_0001>
module attributes {stable_mosaic.version = 11 : i64} {
  func.func @_critic_kernel(%arg0: i32, %arg1: memref<24x24xf32, #tpu.memory_space<vmem>>, %arg2: memref<24x8xf32, #tpu.memory_space<vmem>>, %arg3: memref<24x32xf32, #tpu.memory_space<vmem>>, %arg4: memref<8x32xf32, #tpu.memory_space<vmem>>, %arg5: memref<1x32xf32, #tpu.memory_space<vmem>>, %arg6: memref<1x32xf32, #tpu.memory_space<vmem>>, %arg7: memref<1x1xf32, #tpu.memory_space<vmem>>, %arg8: memref<1x1x24xf32, #tpu.memory_space<vmem>>) attributes {dimension_semantics = [#tpu.dimension_semantics<parallel>], iteration_bounds = array<i64: 2>, scalar_prefetch = 0 : i64, scratch_operands = 0 : i64, tpu.core_type = #tpu.core_type<tc>, window_params = [{transform_indices = @transform_0, window_bounds = array<i64: 24, 24>}, {transform_indices = @transform_1, window_bounds = array<i64: 24, 8>}, {pipeline_mode = #tpu.pipeline_mode<synchronous>, transform_indices = @transform_2, window_bounds = array<i64: 24, 32>}, {pipeline_mode = #tpu.pipeline_mode<synchronous>, transform_indices = @transform_3, window_bounds = array<i64: 8, 32>}, {pipeline_mode = #tpu.pipeline_mode<synchronous>, transform_indices = @transform_4, window_bounds = array<i64: 1, 32>}, {pipeline_mode = #tpu.pipeline_mode<synchronous>, transform_indices = @transform_5, window_bounds = array<i64: 1, 32>}, {pipeline_mode = #tpu.pipeline_mode<synchronous>, transform_indices = @transform_6, window_bounds = array<i64: 1, 1>}, {transform_indices = @transform_7, window_bounds = array<i64: 1, 1, 24>}]} {
    %c0 = arith.constant 0 : index
    %c0_0 = arith.constant 0 : index
    %0 = vector.load %arg1[%c0, %c0_0] : memref<24x24xf32, #tpu.memory_space<vmem>>, vector<24x24xf32>
    %c0_1 = arith.constant 0 : index
    %c0_2 = arith.constant 0 : index
    %1 = vector.load %arg3[%c0_1, %c0_2] : memref<24x32xf32, #tpu.memory_space<vmem>>, vector<24x32xf32>
    %cst = arith.constant dense<0.000000e+00> : vector<24x32xf32>
    %2 = tpu.matmul %0, %1, %cst {dimension_numbers = #tpu.dot_dimension_numbers<[1], [0], [0], [1], [0, 0, 1, 1], [], []>} : vector<24x24xf32>, vector<24x32xf32>, vector<24x32xf32> -> vector<24x32xf32>
    %c0_3 = arith.constant 0 : index
    %c0_4 = arith.constant 0 : index
    %3 = vector.load %arg2[%c0_3, %c0_4] : memref<24x8xf32, #tpu.memory_space<vmem>>, vector<24x8xf32>
    %c0_5 = arith.constant 0 : index
    %c0_6 = arith.constant 0 : index
    %4 = vector.load %arg4[%c0_5, %c0_6] : memref<8x32xf32, #tpu.memory_space<vmem>>, vector<8x32xf32>
    %cst_7 = arith.constant dense<0.000000e+00> : vector<24x32xf32>
    %5 = tpu.matmul %3, %4, %cst_7 {dimension_numbers = #tpu.dot_dimension_numbers<[1], [0], [0], [1], [0, 0, 1, 1], [], []>} : vector<24x8xf32>, vector<8x32xf32>, vector<24x32xf32> -> vector<24x32xf32>
    %6 = arith.addf %2, %5 : vector<24x32xf32>
    %c0_8 = arith.constant 0 : index
    %c0_9 = arith.constant 0 : index
    %7 = vector.load %arg5[%c0_8, %c0_9] : memref<1x32xf32, #tpu.memory_space<vmem>>, vector<1x32xf32>
    %8 = vector.broadcast %7 : vector<1x32xf32> to vector<24x32xf32>
    %9 = arith.addf %6, %8 : vector<24x32xf32>
    %cst_10 = arith.constant 0.000000e+00 : f32
    %10 = vector.broadcast %cst_10 : f32 to vector<24x32xf32>
    %11 = arith.cmpf ogt, %9, %10 : vector<24x32xf32>
    %cst_11 = arith.constant 2.000000e-01 : f32
    %12 = vector.broadcast %cst_11 : f32 to vector<24x32xf32>
    %13 = arith.mulf %12, %9 : vector<24x32xf32>
    %14 = arith.select %11, %9, %13 : vector<24x32xi1>, vector<24x32xf32>
    %c0_12 = arith.constant 0 : index
    %c0_13 = arith.constant 0 : index
    %15 = vector.load %arg6[%c0_12, %c0_13] : memref<1x32xf32, #tpu.memory_space<vmem>>, vector<1x32xf32>
    %cst_14 = arith.constant dense<0.000000e+00> : vector<1x24xf32>
    %16 = tpu.matmul %15, %14, %cst_14 {dimension_numbers = #tpu.dot_dimension_numbers<[1], [1], [0], [0], [0, 0, 1, 0], [], []>} : vector<1x32xf32>, vector<24x32xf32>, vector<1x24xf32> -> vector<1x24xf32>
    %c0_15 = arith.constant 0 : index
    %c0_16 = arith.constant 0 : index
    %17 = vector.load %arg7[%c0_15, %c0_16] : memref<1x1xf32, #tpu.memory_space<vmem>>, vector<1x1xf32>
    %18 = vector.broadcast %17 : vector<1x1xf32> to vector<1x24xf32>
    %19 = arith.addf %16, %18 : vector<1x24xf32>
    %20 = vector.shape_cast %19 : vector<1x24xf32> to vector<1x1x24xf32>
    %c0_17 = arith.constant 0 : index
    %c0_18 = arith.constant 0 : index
    %c0_19 = arith.constant 0 : index
    %21 = vector.load %arg8[%c0_17, %c0_18, %c0_19] : memref<1x1x24xf32, #tpu.memory_space<vmem>>, vector<1x1x24xf32>
    tpu.vector_store %arg8[%c0_17, %c0_18, %c0_19], %20 {strides = array<i32>} : memref<1x1x24xf32, #tpu.memory_space<vmem>>, vector<1x1x24xf32>,
    return
  }
  func.func @transform_0(%arg0: i32) -> (i32, i32) {
    %c0_i32 = arith.constant 0 : i32
    %c0_i32_0 = arith.constant 0 : i32
    return %arg0, %c0_i32 : i32, i32
  }
  func.func @transform_1(%arg0: i32) -> (i32, i32) {
    %c0_i32 = arith.constant 0 : i32
    %c0_i32_0 = arith.constant 0 : i32
    return %arg0, %c0_i32 : i32, i32
  }
  func.func @transform_2(%arg0: i32) -> (i32, i32) {
    %c0_i32 = arith.constant 0 : i32
    %c0_i32_0 = arith.constant 0 : i32
    %c0_i32_1 = arith.constant 0 : i32
    return %c0_i32, %c0_i32_0 : i32, i32
  }
  func.func @transform_3(%arg0: i32) -> (i32, i32) {
    %c0_i32 = arith.constant 0 : i32
    %c0_i32_0 = arith.constant 0 : i32
    %c0_i32_1 = arith.constant 0 : i32
    return %c0_i32, %c0_i32_0 : i32, i32
  }
  func.func @transform_4(%arg0: i32) -> (i32, i32) {
    %c0_i32 = arith.constant 0 : i32
    %c0_i32_0 = arith.constant 0 : i32
    %c0_i32_1 = arith.constant 0 : i32
    return %c0_i32, %c0_i32_0 : i32, i32
  }
  func.func @transform_5(%arg0: i32) -> (i32, i32) {
    %c0_i32 = arith.constant 0 : i32
    %c0_i32_0 = arith.constant 0 : i32
    %c0_i32_1 = arith.constant 0 : i32
    return %c0_i32, %c0_i32_0 : i32, i32
  }
  func.func @transform_6(%arg0: i32) -> (i32, i32) {
    %c0_i32 = arith.constant 0 : i32
    %c0_i32_0 = arith.constant 0 : i32
    %c0_i32_1 = arith.constant 0 : i32
    return %c0_i32, %c0_i32_0 : i32, i32
  }
  func.func @transform_7(%arg0: i32) -> (i32, i32, i32) {
    %c0_i32 = arith.constant 0 : i32
    %c0_i32_0 = arith.constant 0 : i32
    %c0_i32_1 = arith.constant 0 : i32
    return %arg0, %c0_i32, %c0_i32_0 : i32, i32, i32
  }
}

</mosaic_0001>

<bundles_post_ra>
// kernel: tpu_custom_call.1
= control target key start
LH: loop header
LB: loop body
LE: loop exit
PB: predicated region body
PF: predicated region fallthrough
CT: control target
= control target key end

     0   :  { %s839_s0 = inlined_call_operand.vmem [shape: f32[40,24], index: 0, kind: input, shape index: {}]   ;;  %s840_s1 = inlined_call_operand.vmem [shape: f32[40,8], index: 1, kind: input, shape index: {}]   ;;  %s841_s2 = inlined_call_operand.vmem [shape: f32[24,32], index: 2, kind: input, shape index: {}]   ;;  %s842_s3 = inlined_call_operand.vmem [shape: f32[8,32], index: 3, kind: input, shape index: {}]   ;;  %s843_s4 = inlined_call_operand.vmem [shape: f32[1,32], index: 4, kind: input, shape index: {}]   ;;  %s844_s5 = inlined_call_operand.vmem [shape: f32[1,32], index: 5, kind: input, shape index: {}]   ;;  %s845_s6 = inlined_call_operand.<no memory space> [shape: f32[1,1], index: 6, kind: input, shape index: {}]   ;;  %s846_s7 = inlined_call_operand.hbm [shape: f32[2,1,24], index: 7, kind: output, shape index: {}]  }
   0x1   :  { %v12_v0 = vstv %s845_s6 }
   0x2   :  { %13 = vst [vmem:[#allocation2] sm:$0x1] %v12_v0 }
   0x3   :  { %14 = vsyncpa [#allocation4], 0 }
   0x4   :  { %16 = vsyncpa [#allocation4 + $0x1], 0  ;;  %s734_s26 = smov 0   ;;  %s736_s27 = smov 0  }
   0x5   :  { %s738_s28 = smov 0   ;;  %s740_s29 = smov 0  }
   0x6 LB: > { %s755_s6 = sadd.s32 4294967295, %s688_s29   ;;  %s563_s30 = sadd.s32 4294967294, %s688_s29   ;;  %s688_s29 = sphi %s740_s29, %s852_s29   ;;  %s684_s28 = sphi %s738_s28, %s851_s28   ;;  %s680_s27 = sphi %s736_s27, %s850_s27   ;;  %s676_s26 = sphi %s734_s26, %s849_s26  }
   0x7   : > { %s759_s8 = sadd.s32 1, %s688_s29   ;;  %s186_s9 = sadd.s32 1, %s684_s28 }
   0x8   : > { %s183_s10 = ssub.s32 %s688_s29, %s759_s8  ;;  %p196_p0 = scmp.ne.s32.totalorder %s684_s28, %s680_s27 }
   0x9   : > { %p184_p1 = scmp.eq.s32.totalorder %s183_s10, 0  ;;  %p197_p2 = scmp.eq.s32.totalorder %s755_s6, 1 }
   0xa   : > { %p202_p3 = scmp.ne.s32.totalorder %s680_s27, %s676_s26  ;;  %p203_p4 = scmp.eq.s32.totalorder %s563_s30, 1 }
   0xb   : > { %s770_s11 = scalar_select %p184_p1, %s684_s28, %s186_s9  }
   0xc   : > { %p772_p5 = por %p197_p2, %p196_p0  ;;  %p776_p6 = por %p203_p4, %p202_p3 }
   0xd   : > { %p566_p7 = scmp.ge.s32.totalorder %s688_s29, 1  ;;  %p270_p8 = scmp.lt.s32.totalorder %s688_s29, 3 }
   0xf   : > { %p271_p9 = pnand %p566_p7, %p270_p8 }
  0x10   : > { %s314_s20 = smul.u32 (!%p271_p9), 3, %s755_s6  ;;  %s312_s19 = sand.u32 (!%p271_p9), 1, %s680_s27  }
  0x11   : > { %274 = sbr.rel (%p271_p9) target bundleno = 323 (0x143), region = 48  ;;  %s492_s22 = scalar_lea.hbm (!%p271_p9), %s846_s7, %s755_s6 }
  0x12   : > { %p319_p10 = scmp.lt.s32.totalorder (!%p271_p9), %s314_s20, 4  ;;  %s496_s25 = sshll.u32 (!%p271_p9), %s492_s22, 4  ;;  %s497_s25 = int_to_ptr.hbm [resolvable:$true] %s496_s25 }
  0x13   : > { %s640_s9 = sshra.s32 (!%p271_p9), %s497_s25, 4  ;;  %s646_s15 = scalar_lea.hbm (!%p271_p9), %s846_s7, 2  ;;  %s641_s9 = int_to_ptr.hbm [resolvable:$true] %s640_s9 }
  0x14   : > { %s642_s10 = scalar_lea.hbm (!%p271_p9), %s641_s9, 1  ;;  %p647_p0 = scmp.lt.s32.totalorder (!%p271_p9), %s641_s9, %s846_s7 }
  0x15   : > { %p643_p11 = scmp.ne.s32.totalorder (!%p271_p9), %s641_s9, %s642_s10  ;;  %p648_p1 = scmp.lt.s32.totalorder (!%p271_p9), %s646_s15, %s642_s10 }
  0x16   : > { %v347_v1 = vld [vmem:[%s841_s2 + $0x10] sm:$0xff]  ;;  %v346_v2 = vld [vmem:[%s841_s2 + $0x8] sm:$0xff]  ;;  %v351_v3 = vld [vmem:[%s842_s3] sm:$0xff]  ;;  %s854_s20 = smov (!%p319_p10, %s314_s20), 4  ;;  %vm352_vm0 = vcmask 64512   ;;  %vm388_vm1 = vcmask 195584  }
  0x17   : > { %411 = vmatpush.msra.mxu1 %v347_v1  ;;  %581 = vmatpush.msra.mxu3 %v347_v1  ;;  %v345_v4 = vld [vmem:[%s841_s2] sm:$0xff]  ;;  %s567_s23 = sshll.u32 %s854_s20, 3  ;;  %v690_v13 = vmov 0   ;;  %vm448_vm3 = vcmask 261120   ;;  %vm481_vm6 = vcmask 188416   ;;  %p644_p12 = pnand %p643_p11, %p772_p5 }
  0x18   : > { %377 = vmatpush.msra.mxu0 %v351_v3  ;;  %s336_s30 = scalar_lea.vmem %s840_s1, %s567_s23  ;;  %s322_s14 = scalar_lea.vmem %s839_s0, %s567_s23  ;;  %v441_v12 = vld [vmem:[#allocation2] sm:$0x1]  ;;  %624 = vset.pattern.permute.xlu0 %v690_v13 }
  0x19   : > { %412 = vmatpush.msra.mxu1 %v346_v2  ;;  %582 = vmatpush.msra.mxu3 %v346_v2  ;;  %v348_v5 = vld [vmem:[%s336_s30] sm:$0xff]  ;;  %v343_v7 = vld [vmem:[%s322_s14 + $0x8] sm:$0xff]  ;;  %v344_v9 = vld [vmem:[%s322_s14 + $0x10] sm:$0xff]  ;;  %s313_s23 = scalar_lea.vmem [#allocation3], %s312_s19  ;;  %p645_p13 = pneg %p644_p12 }
  0x1a   : > { %v342_v6 = vld [vmem:[%s322_s14] sm:$0xff]  ;;  %569 = vmatmul.msk.f32.vlgmr.msra.gmra.mxu0 %vm352_vm0, %v348_v5  ;;  %v349_v8 = vld [vmem:[%s336_s30 + $0x8] sm:$0xff]  ;;  %v350_v10 = vld [vmem:[%s336_s30 + $0x10] sm:$0xff]  ;;  %444 = vperm.xlu0 %624, %v441_v12   ;;  %s494_s24 = sshll.u32 %s313_s23, 4  ;;  %s484_s30 = scalar_lea.sflag [#allocation4], %s312_s19  ;;  %s495_s24 = int_to_ptr.vmem [resolvable:$true] %s494_s24 }
  0x1b   : > { %413 = vmatpush.msra.mxu1 %v345_v4  ;;  %583 = vmatpush.msra.mxu3 %v345_v4  ;;  %v625_v20 = vld [vmem:[%s843_s4] ss:$0 sm:$0xff]  ;;  %p649_p2 = por %p648_p1, %p647_p0 }
  0x1c   : > { %572 = vmatmul.msk.f32.vlgmr.msra.gmra.mxu1 %vm388_vm1, %v342_v6  ;;  %573 = vmatmul.msk.f32.vlgmr.msra.gmra.mxu3 %vm388_vm1, %v343_v7  ;;  %v440_v32 = vld [vmem:[%s844_s5] sm:$0x1] }
  0x1d   : > { %p650_p3 = pnand %p649_p2, %p645_p13 }
  0x22   : > { %570 = vmatmul.msk.f32.gmra.mxu0 %vm352_vm0, %v349_v8 }
  0x24   : > { %574 = vmatmul.msk.f32.gmra.mxu3 %vm388_vm1, %v344_v9 }
  0x2a   : > { %571 = vmatmul.msk.f32.gmra.mxu0 %vm352_vm0, %v350_v10 }
  0x8c   : > { %v445_v33 = vpop.permute.xlu0 %444 }
  0x8d   : > { %v447_v34 = vperm.slane %v445_v33, 0 }
  0x97   : > { %v379_v11 = vpop.f32.mrf.mxu0 }
  0x99   : > { %v415_v18 = vpop.f32.mrf.mxu1 }
  0x9a   : > { %v416_v22 = vadd.f32 %v415_v18, %v379_v11 }
  0x9c   : > { %v428_v26 = vadd.f32 %v625_v20, %v416_v22 }
  0x9e   : > { %v434_v30 = vmul.f32 0.2, %v428_v26  ;;  %vm431_vm5 = vcmp.gt.f32.partialorder %v428_v26, 0.0 }
  0x9f   : > { %v418_v14 = vpop.f32.mrf.mxu3  ;;  %v382_v15 = vpop.f32.mrf.mxu0 }
  0xa0   : > { %v419_v16 = vadd.f32 %v418_v14, %v382_v15  ;;  %v437_v31 = vsel %vm431_vm5, %v428_v26, %v434_v30 }
  0xa2   : > { %v429_v23 = vadd.f32 %v625_v20, %v419_v16 }
  0xa4   : > { %v435_v28 = vmul.f32 0.2, %v429_v23  ;;  %vm432_vm4 = vcmp.gt.f32.partialorder %v429_v23, 0.0 }
  0xa6   : > { %v438_v29 = vsel %vm432_vm4, %v429_v23, %v435_v28 }
  0xa7   : > { %v421_v17 = vpop.f32.mrf.mxu3  ;;  %v385_v19 = vpop.f32.mrf.mxu0 }
  0xa8   : > { %v422_v21 = vadd.f32 %v421_v17, %v385_v19 }
  0xaa   : > { %v430_v24 = vadd.f32 %v625_v20, %v422_v21 }
  0xac   : > { %vm433_vm2 = vcmp.gt.f32.partialorder %v430_v24, 0.0  ;;  %v436_v25 = vmul.f32 0.2, %v430_v24 }
  0xae   : > { %v439_v27 = vsel %vm433_vm2, %v430_v24, %v436_v25 }
  0xaf   : > { %575 = vmatpush.xpose.msk.msra.mxu2 %vm448_vm3, %v439_v27 }
  0xb3   : > { %576 = vmatpush.xpose.msk.msra.mxu2 %vm448_vm3, %v438_v29 }
  0xb7   : > { %577 = vmatpush.xpose.msk.msra.mxu2 %vm448_vm3, %v437_v31 }
  0xba   : > { %578 = vmatmul.msk.f32.vlgmr.msra.gmra.mxu2 %vm448_vm3, %v440_v32 }
 0x13d   : > { %v478_v35 = vpop.f32.mrf.mxu2 }
 0x13e   : > { %v479_v36 = vadd.f32 %v478_v35, %v447_v34 }
 0x140   : > { %482 = vst.msk [vmem:[%s313_s23] sm:$0x1] %vm481_vm6, %v479_v36 }
 0x141   : > { %653 = shalt.err (!%p650_p3)
}
 0x142   : > { %584 = dma.vmem_to_hbm [thread:$0]  (%p772_p5), %s495_s24, 16, %s497_s25, %s484_s30  }
 0x143 PF: > { %p590_p4 = scmp.ge.s32.totalorder %s688_s29, 2  ;;  %s508_s18 = sand.u32 1, %s676_s26  }
 0x144   : > { %s509_s19 = scalar_lea.sflag [#allocation4], %s508_s18 }
 0x145   : > { %p587_p7 = pnand %p590_p4, %p776_p6 }
 0x147   : > { %p588_p8 = pneg %p587_p7 }
 0x149   : > { %671 = dma.done.wait (%p588_p8), %s509_s19, 16  }
 0x14a   : > { %673 = vsyncadd (%p588_p8), %s509_s19, 4294967280  ;;  %p19_p9 = scmp.ge.s32.totalorder %s759_s8, 4   ;;  %s849_s26 = smov %s680_s27 }
 0x14b   : > { %s850_s27 = smov %s684_s28  ;;  %s851_s28 = smov %s770_s11 }
 0x14c   : > { %s852_s29 = smov %s759_s8  ;;  %21 = sbr.rel (!%p19_p9) target bundleno = 6 (0x6), region = 86 }
 0x151   :  { %514 = vsyncpa [#allocation4], 1 }
 0x152   :  { %516 = vsyncpa [#allocation4 + $0x1], 1 }

</bundles_post_ra>
